<compile_context>
chip_gen: v7x
topology: tpu7x:2x2x1
jax: 0.10.0
libtpu: 0.0.40
codegen_flags: <defaults>
</compile_context>

<pallas_src>
import numpy as np
import jax
import jax.numpy as jnp
from jax.experimental import pallas as pl
from jax.experimental.pallas import tpu as pltpu


def _conv_selection_tensor(H, W, KH, KW):
    """S[k, q, p] = 1 iff input pixel q feeds output pixel p through tap k
    (stride 1, 'same' padding). Pure-Python/numpy constant, host-only."""
    S = np.zeros((KH * KW, H * W, H * W), dtype=np.float32)
    for ph in range(H):
        for pw in range(W):
            p = ph * W + pw
            for kh in range(KH):
                for kw in range(KW):
                    qh = ph + kh - (KH // 2)
                    qw = pw + kw - (KW // 2)
                    if 0 <= qh < H and 0 <= qw < W:
                        S[kh * KW + kw, qh * W + qw, p] = 1.0
    return S


def conv_cat_kernel(x_ref, t_ref, o_ref):
    # x_ref: [N, C_in*H*W]            (16, 27)
    # t_ref: [C_in*H*W, 3*C_out*H*W]  (27, 81)  -- conv Toeplitz with cat folded in
    # o_ref: [N, 3*C_out*H*W]         (16, 81)
    o_ref[...] = jnp.dot(
        x_ref[...],
        t_ref[...],
        preferred_element_type=jnp.float32,
        precision=jax.lax.Precision.HIGHEST,
    ).astype(o_ref.dtype)


def make_conv2d_cat(w_oihw, H, W, reps=3):
    """Factory: builds the Toeplitz matrix T once on the host (weights are static
    for inference) and returns a jitted fn whose body is only
    reshape -> pallas_call -> reshape (a single device launch)."""
    w = np.asarray(w_oihw, dtype=np.float32)          # one-time host transfer
    C_out, C_in, KH, KW = w.shape

    S = _conv_selection_tensor(H, W, KH, KW)          # [KH*KW, H*W, H*W]

    # Fold the triple concat into the weight: cat([y,y,y],1) channel order is
    # [y0,y1,y2, y0,y1,y2, y0,y1,y2] == conv with the weight replicated along C_out.
    w_rep = np.concatenate([w] * reps, axis=0).reshape(reps * C_out, C_in, KH * KW)
    # T[(ci,q), ((rep*C_out+co), p)] = sum_k w[co,ci,k] * S[k,q,p]
    T_np = np.einsum("oik,kqp->iqop", w_rep, S).reshape(
        C_in * H * W, reps * C_out * H * W)           # [27, 81]
    T = jnp.asarray(T_np)                             # closed-over device constant

    @jax.jit
    def conv2d_cat(x_nchw):
        N = x_nchw.shape[0]
        x2 = x_nchw.reshape(N, C_in * H * W)          # [16, 27], free reshape
        out_flat = pl.pallas_call(
            conv_cat_kernel,
            out_shape=jax.ShapeDtypeStruct((N, reps * C_out * H * W), x_nchw.dtype),
            in_specs=[
                pl.BlockSpec(memory_space=pltpu.MemorySpace.VMEM),
                pl.BlockSpec(memory_space=pltpu.MemorySpace.VMEM),
            ],
            out_specs=pl.BlockSpec(memory_space=pltpu.MemorySpace.VMEM),
        )(x2, T)
        # [N, 3*C_out*H*W] -> NCHW [N, 3*C_out, H, W] (row-major split: free reshape)
        return out_flat.reshape(N, reps * C_out, H, W)

    return conv2d_cat


if __name__ == "__main__":
    key = jax.random.PRNGKey(0)
    kx, kw = jax.random.split(key)

    # Shapes from the PyTorch script: x = randn(16, 3, 3, 3)
    x = jax.random.normal(kx, (16, 3, 3, 3), dtype=jnp.float32)
    # Conv2d(3, 3, kernel_size=3, bias=False) weight: OIHW [3, 3, 3, 3]
    w = jax.random.normal(kw, (3, 3, 3, 3), dtype=jnp.float32) * 0.1

    conv2d_cat = make_conv2d_cat(w, H=3, W=3, reps=3)
    out = jax.block_until_ready(conv2d_cat(x))
    assert out.shape == (16, 9, 3, 3), out.shape

    # Reference check against XLA's conv + concat (same pinned precision).
    ref = jax.lax.conv_general_dilated(
        x, w, window_strides=(1, 1), padding=((1, 1), (1, 1)),
        dimension_numbers=("NCHW", "OIHW", "NCHW"),
        precision=jax.lax.Precision.HIGHEST,
    )
    ref = jnp.concatenate([ref, ref, ref], axis=1)
    assert jnp.allclose(out, ref, atol=1e-4, rtol=1e-4), float(jnp.max(jnp.abs(out - ref)))

    print("KERNEL_OK")
</pallas_src>

<mosaic_0001>
module attributes {stable_mosaic.version = 11 : i64} {
  func.func @conv_cat_kernel(%arg0: memref<16x27xf32, #tpu.memory_space<vmem>>, %arg1: memref<27x81xf32, #tpu.memory_space<vmem>>, %arg2: memref<16x81xf32, #tpu.memory_space<vmem>>) attributes {dimension_semantics = [], scalar_prefetch = 0 : i64, scratch_operands = 0 : i64, tpu.core_type = #tpu.core_type<tc>} {
    %c0 = arith.constant 0 : index
    %c0_0 = arith.constant 0 : index
    %0 = vector.load %arg0[%c0, %c0_0] : memref<16x27xf32, #tpu.memory_space<vmem>>, vector<16x27xf32>
    %c0_1 = arith.constant 0 : index
    %c0_2 = arith.constant 0 : index
    %1 = vector.load %arg1[%c0_1, %c0_2] : memref<27x81xf32, #tpu.memory_space<vmem>>, vector<27x81xf32>
    %cst = arith.constant dense<0.000000e+00> : vector<16x81xf32>
    %2 = tpu.matmul %0, %1, %cst {dimension_numbers = #tpu.dot_dimension_numbers<[1], [0], [0], [1], [0, 0, 1, 1], [], []>, precision = #tpu.contract_precision<fp32>} : vector<16x27xf32>, vector<27x81xf32>, vector<16x81xf32> -> vector<16x81xf32>
    %c0_3 = arith.constant 0 : index
    %c0_4 = arith.constant 0 : index
    %3 = vector.load %arg2[%c0_3, %c0_4] : memref<16x81xf32, #tpu.memory_space<vmem>>, vector<16x81xf32>
    tpu.vector_store %arg2[%c0_3, %c0_4], %2 {strides = array<i32>} : memref<16x81xf32, #tpu.memory_space<vmem>>, vector<16x81xf32>,
    return
  }
}

</mosaic_0001>

<bundles_post_ra>
// kernel: conv2d_cat.1
= control target key start
LH: loop header
LB: loop body
LE: loop exit
PB: predicated region body
PF: predicated region fallthrough
CT: control target
= control target key end

     0   :  { %vm24_vm0 = vcmask 1042432   ;;  %vm17_vm1 = vcmask 220160   ;;  %vm556_vm2 = vcmask 662528   ;;  %s774_s1 = inlined_call_operand.vmem [shape: f32[27,81], index: 1, kind: input, shape index: {}]   ;;  %s775_s0 = inlined_call_operand.vmem [shape: f32[16,27], index: 0, kind: input, shape index: {}]   ;;  %s776_s2 = inlined_call_operand.vmem [shape: f32[16,81], index: 2, kind: output, shape index: {}]  }
   0x1   :  { %v13_v0 = vld [vmem:[%s774_s1] sm:$0xff]  ;;  %v14_v1 = vld [vmem:[%s774_s1 + $0x8] sm:$0xff]  ;;  %v15_v2 = vld [vmem:[%s774_s1 + $0x10] sm:$0xff] }
   0x2   :  { %v29_v3 = vand.u32 4294901760, %v13_v0  ;;  %v32_v4 = vand.u32 4294901760, %v14_v1  ;;  %v16_v5 = vld [vmem:[%s774_s1 + $0x18] sm:$0x7]  ;;  %v35_v6 = vand.u32 4294901760, %v15_v2  ;;  %v11_v7 = vld [vmem:[%s775_s0] sm:$0xff] }
   0x3   :  { %v26_v8 = vsel %vm24_vm0, %v16_v5, 0  ;;  %v12_v9 = vld [vmem:[%s775_s0 + $0x8] sm:$0xff]  ;;  %v19_v10 = vsel %vm17_vm1, %v11_v7, 0 }
   0x4   :  { %v665_v11 = vpack.c.bf16 %v32_v4, %v29_v3  ;;  %v38_v12 = vand.u32 4294901760, %v26_v8  ;;  %v22_v13 = vsel %vm17_vm1, %v12_v9, 0  ;;  %v756_v14 = vand.u32 4294901760, %v19_v10 }
   0x5   :  { %v758_v15 = vand.u32 4294901760, %v22_v13  ;;  %v119_v16 = vsub.f32 %v13_v0, %v29_v3  ;;  %v126_v17 = vsub.f32 %v14_v1, %v32_v4  ;;  %v133_v18 = vsub.f32 %v15_v2, %v35_v6 }
   0x6   :  { %666 = vmatprep.subr.bf16.mxu1 %v665_v11  ;;  %690 = vmatprep.subr.bf16.mxu0 %v665_v11  ;;  %v669_v19 = vpack.c.bf16 %v38_v12, %v35_v6  ;;  %v98_v20 = vsub.f32 %v19_v10, %v756_v14  ;;  %v140_v21 = vsub.f32 %v26_v8, %v38_v12 }
   0x7   :  { %668 = vmatpush3.bf16.msra.mxu1 %v665_v11  ;;  %692 = vmatpush3.bf16.msra.mxu0 %v665_v11  ;;  %v108_v22 = vsub.f32 %v22_v13, %v758_v15  ;;  %v120_v23 = vand.u32 4294901760, %v119_v16  ;;  %v127_v24 = vand.u32 4294901760, %v126_v17  ;;  %v134_v25 = vand.u32 4294901760, %v133_v18 }
   0x8   :  { %670 = vmatprep.subr.bf16.mxu1 %v669_v19  ;;  %694 = vmatprep.subr.bf16.mxu0 %v669_v19  ;;  %v99_v26 = vand.u32 4294901760, %v98_v20  ;;  %v141_v27 = vand.u32 4294901760, %v140_v21  ;;  %v681_v45 = vpack.c.bf16 %v126_v17, %v119_v16  ;;  %v685_v46 = vpack.c.bf16 %v140_v21, %v133_v18 }
   0x9   :  { %v109_v28 = vand.u32 4294901760, %v108_v22  ;;  %v121_v29 = vsub.f32 %v119_v16, %v120_v23  ;;  %v128_v30 = vsub.f32 %v126_v17, %v127_v24  ;;  %v697_v31 = vpack.c.bf16 %v127_v24, %v120_v23 }
   0xa   :  { %v100_v32 = vsub.f32 %v98_v20, %v99_v26  ;;  %640 = vmatprep.mubr.f32.mxu0 %v99_v26  ;;  %v135_v33 = vsub.f32 %v133_v18, %v134_v25  ;;  %v142_v34 = vsub.f32 %v140_v21, %v141_v27  ;;  %v701_v43 = vpack.c.bf16 %v141_v27, %v134_v25 }
   0xb   :  { %672 = vmatpush3.bf16.msra.mxu1 %v669_v19  ;;  %696 = vmatpush3.bf16.msra.mxu0 %v669_v19  ;;  %v110_v35 = vsub.f32 %v108_v22, %v109_v28  ;;  %v122_v36 = vand.u32 4294901760, %v121_v29  ;;  %v129_v37 = vand.u32 4294901760, %v128_v30 }
   0xc   :  { %v101_v38 = vand.u32 4294901760, %v100_v32  ;;  %698 = vmatprep.subr.bf16.mxu0 %v697_v31  ;;  %v136_v39 = vand.u32 4294901760, %v135_v33  ;;  %v143_v40 = vand.u32 4294901760, %v142_v34 }
   0xd   :  { %v111_v41 = vand.u32 4294901760, %v110_v35  ;;  %v673_v42 = vpack.c.bf16 %v129_v37, %v122_v36 }
   0xe   :  { %607 = vmatprep.mubr.f32.mxu1 %v101_v38  ;;  %641 = vmatmul.mubr.f32.vlgmr.msra.gmra.mrb[0].mxu0 %v109_v28  ;;  %v677_v44 = vpack.c.bf16 %v143_v40, %v136_v39 }
   0xf   :  { %608 = vmatmul.mubr.f32.vlgmr.msra.gmra.mrb[0].mxu1 %v111_v41  ;;  %674 = vmatprep.subr.bf16.mxu1 %v673_v42 }
  0x10   :  { %676 = vmatpush3.bf16.msra.mxu1 %v673_v42  ;;  %700 = vmatpush3.bf16.msra.mxu0 %v697_v31 }
  0x11   :  { %678 = vmatprep.subr.bf16.mxu1 %v677_v44  ;;  %702 = vmatprep.subr.bf16.mxu0 %v701_v43 }
  0x12   :  { %618 = vmatprep.mubr.f32.mxu1 %v756_v14  ;;  %651 = vmatprep.mubr.f32.mxu0 %v756_v14 }
  0x14   :  { %680 = vmatpush3.bf16.msra.mxu1 %v677_v44  ;;  %704 = vmatpush3.bf16.msra.mxu0 %v701_v43 }
  0x15   :  { %682 = vmatprep.subr.bf16.mxu1 %v681_v45  ;;  %706 = vmatprep.subr.bf16.mxu0 %v665_v11 }
  0x17   :  { %619 = vmatmul.mubr.f32.vlgmr.msra.gmra.mrb[0].mxu1 %v758_v15  ;;  %652 = vmatmul.mubr.f32.vlgmr.msra.gmra.mrb[0].mxu0 %v758_v15 }
  0x18   :  { %684 = vmatpush3.bf16.msra.mxu1 %v681_v45  ;;  %708 = vmatpush3.bf16.msra.mxu0 %v665_v11 }
  0x19   :  { %686 = vmatprep.subr.bf16.mxu1 %v685_v46  ;;  %710 = vmatprep.subr.bf16.mxu0 %v669_v19 }
  0x1a   :  { %629 = vmatprep.mubr.f32.mxu1 %v98_v20  ;;  %662 = vmatprep.mubr.f32.mxu0 %v756_v14 }
  0x1c   :  { %688 = vmatpush3.bf16.msra.mxu1 %v685_v46  ;;  %712 = vmatpush3.bf16.msra.mxu0 %v669_v19 }
  0x1f   :  { %630 = vmatmul.mubr.f32.vlgmr.msra.gmra.mrb[0].mxu1 %v108_v22  ;;  %663 = vmatmul.mubr.f32.vlgmr.msra.gmra.mrb[0].mxu0 %v758_v15 }
  0xf2   :  { %v631_v47 = vpop.f32.mrb[0].mxu1  ;;  %v664_v48 = vpop.f32.mrb[0].mxu0 }
  0xf3   :  { %v713_v49 = vadd.f32 %v664_v48, %v631_v47  ;;  %v290_v50 = vpop.f32.mrb[1].mxu1  ;;  %v546_v51 = vpop.f32.mrb[1].mxu0 }
  0xf4   :  { %v714_v52 = vadd.f32 %v546_v51, %v290_v50 }
  0xf5   :  { %558 = vst.msk [vmem:[%s776_s2 + $0x8] sm:$0xff] %vm556_vm2, %v713_v49 }
  0xf6   :  { %557 = vst.msk [vmem:[%s776_s2] sm:$0xff] %vm556_vm2, %v714_v52 }

</bundles_post_ra>
